<compile_context>
chip_gen: v5e
topology: v5e:2x2
jax: 0.10.0
libtpu: 0.0.40
codegen_flags: <defaults>
</compile_context>

<pallas_src>
import functools

import jax
import jax.numpy as jnp
from jax.experimental import pallas as pl
from jax.experimental.pallas import tpu as pltpu

BCE_WEIGHT = 1.0     # bce_weight=1 (module default)
DICE_WEIGHT = 1.0    # dice_weight=1 (module default)
SMOOTH = 1.0         # WeightedDiceLoss(smooth=1) default from __init__
LANE = 512           # lane-dense stream width (multiple of 128)
MAX_TILE_ROWS = 1024 # (1024,512) f32 x 2 streams x 2 buffers ~ 8 MiB VMEM (v5e-safe)
NUM_PARTS = 2        # parallel grid partitions; shards across the 2 v7x TCs
PAD_LOGIT = -1000.0  # exp(-1000)==0 in f32 -> padded BCE/dice contribution is exactly 0


def _round_up(x, m):
    return ((x + m - 1) // m) * m


def _cdiv(a, b):
    return -(-a // b)


def _combined_loss_kernel(x_ref, t_ref, bce_ref, inter_ref, union_ref, *,
                          tile_rows, lane):
    """One grid step: accumulate partial BCE / dice statistics for one tile.

    x_ref, t_ref:  VMEM (tile_rows, lane) tiles in the caller's native dtypes.
    *_ref outputs: VMEM (8, lane) f32 per-partition partial sums.  Their block
                   index depends only on the parallel axis, so each block stays
                   VMEM-resident across the whole 'arbitrary' axis and is
                   written back to HBM exactly once per partition.
    """
    i = pl.program_id(1)

    @pl.when(i == 0)
    def _init():
        bce_ref[...] = jnp.zeros_like(bce_ref)
        inter_ref[...] = jnp.zeros_like(inter_ref)
        union_ref[...] = jnp.zeros_like(union_ref)

    x = x_ref[...].astype(jnp.float32)   # cast per tile (native dtype streamed)
    t = t_ref[...].astype(jnp.float32)

    # Numerically stable BCE-with-logits.  Padded elements (x=-1000, t=0)
    # contribute exactly 0, so no per-element validity mask is needed.
    bce = jnp.maximum(x, 0.0) - x * t + jnp.log1p(jnp.exp(-jnp.abs(x)))

    # Hard-threshold dice statistics: sigmoid(x) > 0.5  <=>  x > 0.
    pred = x > 0.0
    inter = jnp.where(pred, t, 0.0)          # bin_preds * targets without a mul
    union = pred.astype(jnp.float32) + t     # bin_preds.sum() + targets.sum()

    # Reduce only the row-group axis here; keep (8, lane) vector partials so the
    # expensive cross-lane reduce happens once, outside the kernel.
    g = tile_rows // 8
    bce_ref[...] += jnp.sum(bce.reshape(g, 8, lane), axis=0)
    inter_ref[...] += jnp.sum(inter.reshape(g, 8, lane), axis=0)
    union_ref[...] += jnp.sum(union.reshape(g, 8, lane), axis=0)


def combined_bce_dice_loss(inputs, targets):
    """inputs: logits, targets: {0,1} masks; identical shapes, any float dtype."""
    n = inputs.size
    x = inputs.reshape(-1)      # keep native dtypes; cast happens in-kernel
    t = targets.reshape(-1)

    rows_needed = _cdiv(n, LANE)
    # Multiple of 32 rows keeps f32 / bf16 / int8 tilings all legal.
    tile_rows = max(32, min(MAX_TILE_ROWS,
                            _round_up(_cdiv(rows_needed, NUM_PARTS), 32)))
    rows = _round_up(rows_needed, tile_rows * NUM_PARTS)
    steps_per_part = rows // (tile_rows * NUM_PARTS)

    n_pad = rows * LANE - n
    if n_pad:
        # Pad logits with a large negative value so padded elements contribute
        # exactly 0 to the BCE sum and the dice stats (no mask, no correction).
        # Skipped entirely (no extra HBM pass) when n is already tile-aligned.
        x = jnp.pad(x, (0, n_pad), constant_values=PAD_LOGIT)
        t = jnp.pad(t, (0, n_pad))
    x2 = x.reshape(rows, LANE)
    t2 = t.reshape(rows, LANE)

    cost = pl.CostEstimate(
        flops=15 * rows * LANE,
        transcendentals=2 * rows * LANE,
        bytes_accessed=(x2.size * x2.dtype.itemsize
                        + t2.size * t2.dtype.itemsize
                        + 3 * NUM_PARTS * 8 * LANE * 4))

    in_map = lambda c, i: (c * steps_per_part + i, 0)
    out_spec = pl.BlockSpec((None, 8, LANE), lambda c, i: (c, 0, 0))

    bce_p, inter_p, union_p = pl.pallas_call(
        functools.partial(_combined_loss_kernel, tile_rows=tile_rows, lane=LANE),
        out_shape=(jax.ShapeDtypeStruct((NUM_PARTS, 8, LANE), jnp.float32),
                   jax.ShapeDtypeStruct((NUM_PARTS, 8, LANE), jnp.float32),
                   jax.ShapeDtypeStruct((NUM_PARTS, 8, LANE), jnp.float32)),
        grid=(NUM_PARTS, steps_per_part),
        in_specs=[pl.BlockSpec((tile_rows, LANE), in_map),
                  pl.BlockSpec((tile_rows, LANE), in_map)],
        out_specs=(out_spec, out_spec, out_spec),
        compiler_params=pltpu.CompilerParams(
            dimension_semantics=("parallel", "arbitrary")),
        cost_estimate=cost,
    )(x2, t2)

    # Tiny final combine (3 x 2*8*512 elements) in plain JAX.
    bce_mean = jnp.sum(bce_p) / jnp.float32(n)
    inter_sum = jnp.sum(inter_p)
    union_sum = jnp.sum(union_p)
    dice = (2.0 * inter_sum + SMOOTH) / (union_sum + SMOOTH)
    return BCE_WEIGHT * bce_mean + DICE_WEIGHT * dice


if __name__ == "__main__":
    key = jax.random.PRNGKey(0)
    k_logits, k_targets = jax.random.split(key)

    B, C, H, W = 2, 4, 16, 16
    inputs = jax.random.normal(k_logits, (B, C, H, W), dtype=jnp.float32)
    targets = (jax.random.uniform(k_targets, (B, C, H, W)) > 0.5).astype(jnp.float32)

    loss = combined_bce_dice_loss(inputs, targets)
    jax.block_until_ready(loss)

    # Pure-JAX reference of the same forward semantics (minus centroid term).
    x = inputs.astype(jnp.float32)
    t = targets.astype(jnp.float32)
    bce_ref = jnp.mean(jnp.maximum(x, 0.0) - x * t + jnp.log1p(jnp.exp(-jnp.abs(x))))
    bp = (x > 0.0).astype(jnp.float32)
    dice_ref = (2.0 * jnp.sum(bp * t) + SMOOTH) / (jnp.sum(bp) + jnp.sum(t) + SMOOTH)
    ref = BCE_WEIGHT * bce_ref + DICE_WEIGHT * dice_ref
    assert jnp.allclose(loss, ref, rtol=1e-5, atol=1e-5), (loss, ref)

    print("KERNEL_OK")
</pallas_src>

<mosaic_0001>
module attributes {stable_mosaic.version = 11 : i64} {
  func.func @_combined_loss_kernel(%arg0: i32, %arg1: i32, %arg2: memref<32x512xf32, #tpu.memory_space<vmem>>, %arg3: memref<32x512xf32, #tpu.memory_space<vmem>>, %arg4: memref<1x8x512xf32, #tpu.memory_space<vmem>>, %arg5: memref<1x8x512xf32, #tpu.memory_space<vmem>>, %arg6: memref<1x8x512xf32, #tpu.memory_space<vmem>>) attributes {dimension_semantics = [#tpu.dimension_semantics<parallel>, #tpu.dimension_semantics<arbitrary>], iteration_bounds = array<i64: 2, 1>, scalar_prefetch = 0 : i64, scratch_operands = 0 : i64, tpu.core_type = #tpu.core_type<tc>, window_params = [{transform_indices = @transform_0, window_bounds = array<i64: 32, 512>}, {transform_indices = @transform_1, window_bounds = array<i64: 32, 512>}, {transform_indices = @transform_2, window_bounds = array<i64: 1, 8, 512>}, {transform_indices = @transform_3, window_bounds = array<i64: 1, 8, 512>}, {transform_indices = @transform_4, window_bounds = array<i64: 1, 8, 512>}]} {
    %c0_i32 = arith.constant 0 : i32
    %0 = arith.cmpi eq, %arg1, %c0_i32 : i32
    %1 = arith.extui %0 : i1 to i32
    %c0_i32_0 = arith.constant 0 : i32
    %2 = arith.cmpi ne, %1, %c0_i32_0 : i32
    scf.if %2 {
      %cst_28 = arith.constant 0.000000e+00 : f32
      %46 = vector.broadcast %cst_28 : f32 to vector<8x512xf32>
      %c0_29 = arith.constant 0 : index
      %c0_30 = arith.constant 0 : index
      %c0_31 = arith.constant 0 : index
      %47 = vector.load %arg4[%c0_29, %c0_30, %c0_31] : memref<1x8x512xf32, #tpu.memory_space<vmem>>, vector<1x8x512xf32>
      %48 = vector.shape_cast %47 : vector<1x8x512xf32> to vector<8x512xf32>
      %49 = vector.shape_cast %46 : vector<8x512xf32> to vector<1x8x512xf32>
      tpu.vector_store %arg4[%c0_29, %c0_30, %c0_31], %49 {strides = array<i32>} : memref<1x8x512xf32, #tpu.memory_space<vmem>>, vector<1x8x512xf32>,
      %cst_32 = arith.constant 0.000000e+00 : f32
      %50 = vector.broadcast %cst_32 : f32 to vector<8x512xf32>
      %c0_33 = arith.constant 0 : index
      %c0_34 = arith.constant 0 : index
      %c0_35 = arith.constant 0 : index
      %51 = vector.load %arg5[%c0_33, %c0_34, %c0_35] : memref<1x8x512xf32, #tpu.memory_space<vmem>>, vector<1x8x512xf32>
      %52 = vector.shape_cast %51 : vector<1x8x512xf32> to vector<8x512xf32>
      %53 = vector.shape_cast %50 : vector<8x512xf32> to vector<1x8x512xf32>
      tpu.vector_store %arg5[%c0_33, %c0_34, %c0_35], %53 {strides = array<i32>} : memref<1x8x512xf32, #tpu.memory_space<vmem>>, vector<1x8x512xf32>,
      %cst_36 = arith.constant 0.000000e+00 : f32
      %54 = vector.broadcast %cst_36 : f32 to vector<8x512xf32>
      %c0_37 = arith.constant 0 : index
      %c0_38 = arith.constant 0 : index
      %c0_39 = arith.constant 0 : index
      %55 = vector.load %arg6[%c0_37, %c0_38, %c0_39] : memref<1x8x512xf32, #tpu.memory_space<vmem>>, vector<1x8x512xf32>
      %56 = vector.shape_cast %55 : vector<1x8x512xf32> to vector<8x512xf32>
      %57 = vector.shape_cast %54 : vector<8x512xf32> to vector<1x8x512xf32>
      tpu.vector_store %arg6[%c0_37, %c0_38, %c0_39], %57 {strides = array<i32>} : memref<1x8x512xf32, #tpu.memory_space<vmem>>, vector<1x8x512xf32>,
    } else {
    }
    %c0 = arith.constant 0 : index
    %c0_1 = arith.constant 0 : index
    %3 = vector.load %arg2[%c0, %c0_1] : memref<32x512xf32, #tpu.memory_space<vmem>>, vector<32x512xf32>
    %c0_2 = arith.constant 0 : index
    %c0_3 = arith.constant 0 : index
    %4 = vector.load %arg3[%c0_2, %c0_3] : memref<32x512xf32, #tpu.memory_space<vmem>>, vector<32x512xf32>
    %cst = arith.constant 0.000000e+00 : f32
    %5 = vector.broadcast %cst : f32 to vector<32x512xf32>
    %6 = arith.maximumf %3, %5 : vector<32x512xf32>
    %7 = arith.mulf %3, %4 : vector<32x512xf32>
    %8 = arith.subf %6, %7 : vector<32x512xf32>
    %9 = math.absf %3 : vector<32x512xf32>
    %cst_4 = arith.constant 0.000000e+00 : f32
    %10 = vector.broadcast %cst_4 : f32 to vector<32x512xf32>
    %11 = arith.subf %10, %9 : vector<32x512xf32>
    %12 = math.exp %11 : vector<32x512xf32>
    %13 = math.log1p %12 : vector<32x512xf32>
    %14 = arith.addf %8, %13 : vector<32x512xf32>
    %cst_5 = arith.constant 0.000000e+00 : f32
    %15 = vector.broadcast %cst_5 : f32 to vector<32x512xf32>
    %16 = arith.cmpf ogt, %3, %15 : vector<32x512xf32>
    %cst_6 = arith.constant 0.000000e+00 : f32
    %17 = vector.broadcast %cst_6 : f32 to vector<32x512xf32>
    %18 = arith.select %16, %4, %17 : vector<32x512xi1>, vector<32x512xf32>
    %19 = arith.extui %16 : vector<32x512xi1> to vector<32x512xi32>
    %20 = arith.sitofp %19 : vector<32x512xi32> to vector<32x512xf32>
    %21 = arith.addf %20, %4 : vector<32x512xf32>
    %c0_7 = arith.constant 0 : index
    %c0_8 = arith.constant 0 : index
    %c0_9 = arith.constant 0 : index
    %22 = vector.load %arg4[%c0_7, %c0_8, %c0_9] : memref<1x8x512xf32, #tpu.memory_space<vmem>>, vector<1x8x512xf32>
    %23 = vector.shape_cast %22 : vector<1x8x512xf32> to vector<8x512xf32>
    %24 = vector.shape_cast %14 : vector<32x512xf32> to vector<4x8x512xf32>
    %cst_10 = arith.constant dense<0.000000e+00> : vector<8x512xf32>
    %25 = vector.multi_reduction <add>, %24, %cst_10 [0] : vector<4x8x512xf32> to vector<8x512xf32>
    %26 = arith.addf %23, %25 : vector<8x512xf32>
    %c0_11 = arith.constant 0 : index
    %c0_12 = arith.constant 0 : index
    %c0_13 = arith.constant 0 : index
    %27 = vector.load %arg4[%c0_11, %c0_12, %c0_13] : memref<1x8x512xf32, #tpu.memory_space<vmem>>, vector<1x8x512xf32>
    %28 = vector.shape_cast %27 : vector<1x8x512xf32> to vector<8x512xf32>
    %29 = vector.shape_cast %26 : vector<8x512xf32> to vector<1x8x512xf32>
    tpu.vector_store %arg4[%c0_11, %c0_12, %c0_13], %29 {strides = array<i32>} : memref<1x8x512xf32, #tpu.memory_space<vmem>>, vector<1x8x512xf32>,
    %c0_14 = arith.constant 0 : index
    %c0_15 = arith.constant 0 : index
    %c0_16 = arith.constant 0 : index
    %30 = vector.load %arg5[%c0_14, %c0_15, %c0_16] : memref<1x8x512xf32, #tpu.memory_space<vmem>>, vector<1x8x512xf32>
    %31 = vector.shape_cast %30 : vector<1x8x512xf32> to vector<8x512xf32>
    %32 = vector.shape_cast %18 : vector<32x512xf32> to vector<4x8x512xf32>
    %cst_17 = arith.constant dense<0.000000e+00> : vector<8x512xf32>
    %33 = vector.multi_reduction <add>, %32, %cst_17 [0] : vector<4x8x512xf32> to vector<8x512xf32>
    %34 = arith.addf %31, %33 : vector<8x512xf32>
    %c0_18 = arith.constant 0 : index
    %c0_19 = arith.constant 0 : index
    %c0_20 = arith.constant 0 : index
    %35 = vector.load %arg5[%c0_18, %c0_19, %c0_20] : memref<1x8x512xf32, #tpu.memory_space<vmem>>, vector<1x8x512xf32>
    %36 = vector.shape_cast %35 : vector<1x8x512xf32> to vector<8x512xf32>
    %37 = vector.shape_cast %34 : vector<8x512xf32> to vector<1x8x512xf32>
    tpu.vector_store %arg5[%c0_18, %c0_19, %c0_20], %37 {strides = array<i32>} : memref<1x8x512xf32, #tpu.memory_space<vmem>>, vector<1x8x512xf32>,
    %c0_21 = arith.constant 0 : index
    %c0_22 = arith.constant 0 : index
    %c0_23 = arith.constant 0 : index
    %38 = vector.load %arg6[%c0_21, %c0_22, %c0_23] : memref<1x8x512xf32, #tpu.memory_space<vmem>>, vector<1x8x512xf32>
    %39 = vector.shape_cast %38 : vector<1x8x512xf32> to vector<8x512xf32>
    %40 = vector.shape_cast %21 : vector<32x512xf32> to vector<4x8x512xf32>
    %cst_24 = arith.constant dense<0.000000e+00> : vector<8x512xf32>
    %41 = vector.multi_reduction <add>, %40, %cst_24 [0] : vector<4x8x512xf32> to vector<8x512xf32>
    %42 = arith.addf %39, %41 : vector<8x512xf32>
    %c0_25 = arith.constant 0 : index
    %c0_26 = arith.constant 0 : index
    %c0_27 = arith.constant 0 : index
    %43 = vector.load %arg6[%c0_25, %c0_26, %c0_27] : memref<1x8x512xf32, #tpu.memory_space<vmem>>, vector<1x8x512xf32>
    %44 = vector.shape_cast %43 : vector<1x8x512xf32> to vector<8x512xf32>
    %45 = vector.shape_cast %42 : vector<8x512xf32> to vector<1x8x512xf32>
    tpu.vector_store %arg6[%c0_25, %c0_26, %c0_27], %45 {strides = array<i32>} : memref<1x8x512xf32, #tpu.memory_space<vmem>>, vector<1x8x512xf32>,
    return
  }
  func.func @transform_0(%arg0: i32, %arg1: i32) -> (i32, i32) {
    %c1_i32 = arith.constant 1 : i32
    %0 = arith.muli %arg0, %c1_i32 : i32
    %1 = arith.addi %0, %arg1 : i32
    %c0_i32 = arith.constant 0 : i32
    %c0_i32_0 = arith.constant 0 : i32
    return %1, %c0_i32 : i32, i32
  }
  func.func @transform_1(%arg0: i32, %arg1: i32) -> (i32, i32) {
    %c1_i32 = arith.constant 1 : i32
    %0 = arith.muli %arg0, %c1_i32 : i32
    %1 = arith.addi %0, %arg1 : i32
    %c0_i32 = arith.constant 0 : i32
    %c0_i32_0 = arith.constant 0 : i32
    return %1, %c0_i32 : i32, i32
  }
  func.func @transform_2(%arg0: i32, %arg1: i32) -> (i32, i32, i32) {
    %c0_i32 = arith.constant 0 : i32
    %c0_i32_0 = arith.constant 0 : i32
    %c0_i32_1 = arith.constant 0 : i32
    return %arg0, %c0_i32, %c0_i32_0 : i32, i32, i32
  }
  func.func @transform_3(%arg0: i32, %arg1: i32) -> (i32, i32, i32) {
    %c0_i32 = arith.constant 0 : i32
    %c0_i32_0 = arith.constant 0 : i32
    %c0_i32_1 = arith.constant 0 : i32
    return %arg0, %c0_i32, %c0_i32_0 : i32, i32, i32
  }
  func.func @transform_4(%arg0: i32, %arg1: i32) -> (i32, i32, i32) {
    %c0_i32 = arith.constant 0 : i32
    %c0_i32_0 = arith.constant 0 : i32
    %c0_i32_1 = arith.constant 0 : i32
    return %arg0, %c0_i32, %c0_i32_0 : i32, i32, i32
  }
}

</mosaic_0001>

<bundles_post_ra>
// kernel: tpu_custom_call.1
= control target key start
LH: loop header
LB: loop body
LE: loop exit
PB: predicated region body
PF: predicated region fallthrough
CT: control target
= control target key end

     0   :  { %s2205_s0 = inlined_call_operand.hbm [shape: f32[64,512], index: 0, kind: input, shape index: {}]   ;;  %s2206_s1 = inlined_call_operand.hbm [shape: f32[64,512], index: 1, kind: input, shape index: {}]   ;;  %s2207_s2 = inlined_call_operand.hbm [shape: f32[2,8,512], index: 2, kind: output, shape index: {0}]   ;;  %s2208_s3 = inlined_call_operand.hbm [shape: f32[2,8,512], index: 3, kind: output, shape index: {1}]   ;;  %s2209_s4 = inlined_call_operand.hbm [shape: f32[2,8,512], index: 4, kind: output, shape index: {2}]  }
   0x1   :  { %2237 = sst [smem:[#allocation37_spill]] %s2205_s0 }
   0x2   :  { %10 = vsyncpa [#allocation3], 0 }
   0x3   :  { %12 = vsyncpa [#allocation3 + $0x1], 0 }
   0x4   :  { %13 = vsyncpa [#allocation6], 0 }
   0x5   :  { %15 = vsyncpa [#allocation6 + $0x1], 0 }
   0x6   :  { %16 = vsyncpa [#allocation4], 0 }
   0x7   :  { %18 = vsyncpa [#allocation4 + $0x1], 0 }
   0x8   :  { %19 = vsyncpa [#allocation9], 0 }
   0x9   :  { %21 = vsyncpa [#allocation9 + $0x1], 0  ;;  %s1429_s15 = smov 0   ;;  %s1431_s16 = smov 0  }
   0xa   :  { %s1433_s17 = smov 0   ;;  %s1435_s18 = smov 0  }
   0xb   :  { %s1437_s19 = smov 0   ;;  %s1439_s20 = smov 0  }
   0xc LB: > { %2238 = sst [smem:[#allocation15_spill]] %s1395_s19  ;;  %s1460_s21 = sadd.s32 4294967295, %s1399_s20   ;;  %s1399_s20 = sphi %s1439_s20, %s27_s20   ;;  %s1395_s19 = sphi %s1437_s19, %s2324_s19   ;;  %s1391_s18 = sphi %s1435_s18, %s2323_s18   ;;  %s1387_s17 = sphi %s1433_s17, %s2327_s17   ;;  %s1383_s16 = sphi %s1431_s16, %s2326_s16   ;;  %s1379_s15 = sphi %s1429_s15, %s2325_s15  }
   0xd   : > { %s2210_s22 = sadd.s32 4294967294, %s1399_s20   ;;  %s39_s23 = sadd.s32 1, %s1395_s19 }
   0xe   : > { %s48_s24 = sadd.s32 1, %s1387_s17  ;;  %p41_p0 = scmp.ge.s32.totalorder %s39_s23, 2 }
   0xf   : > { %p55_p1 = scmp.ne.s32.totalorder %s1387_s17, %s1383_s16  ;;  %p56_p2 = scmp.eq.s32.totalorder %s1399_s20, 0 }
  0x10   : > { %p61_p3 = scmp.ne.s32.totalorder %s1383_s16, %s1379_s15  ;;  %s2329_s23 = smov (%p41_p0, %s39_s23), 0 }
  0x11   : > { %2239 = sst [smem:[#allocation16_spill]] %s2329_s23  ;;  %p1472_p4 = por %p56_p2, %p55_p1 }
  0x12   : > { %p62_p5 = scmp.eq.s32.totalorder %s1460_s21, 0  ;;  %s45_s26 = ssub.s32 %s1395_s19, %s2329_s23 }
  0x13   : > { %p113_p6 = scmp.eq.s32.totalorder %s1460_s21, 1  ;;  %p46_p7 = scmp.eq.s32.totalorder %s45_s26, 0 }
  0x14   : > { %p1480_p8 = por %p62_p5, %p61_p3  ;;  %p119_p10 = scmp.eq.s32.totalorder %s2210_s22, 1 }
  0x15   : > { %p1484_p9 = por %p113_p6, %p55_p1  ;;  %p1000_p12 = scmp.ge.s32.totalorder %s1399_s20, 2 }
  0x16   : > { %s1491_s29 = scalar_select %p46_p7, %s1387_s17, %s48_s24  }
  0x17   : > { %p1493_p11 = por %p119_p10, %p61_p3  ;;  %p1076_p13 = scmp.lt.s32.totalorder %s1399_s20, 2 }
  0x18   : > { %s1500_s5 = sand.u32 1, %s1387_s17   ;;  %s1043_s7 = sshll.u32 %s1395_s19, 7 }
  0x19   : > { %s1001_s6 = sshll.u32 %s1500_s5, 7  ;;  %s2244_s0 = sld [smem:[#allocation37_spill]] }
  0x1a   : > { %s195_s11 = scalar_lea.vmem [#allocation2], %s1001_s6  ;;  %p1509_p0 = pnand %p1076_p13, %p1472_p4 }
  0x1b   : > { %s205_s12 = sshll.u32 %s195_s11, 4  ;;  %p1009_p1 = scmp.ge.s32.totalorder %s1399_s20, 1  ;;  %s206_s12 = int_to_ptr.vmem [resolvable:$true] %s205_s12 }
  0x1c   : > { %s192_s24 = scalar_lea.sflag [#allocation3], %s1500_s5  ;;  %s1401_s26 = smov 512  }
  0x1d   : > { %s1402_s22 = smov 32   ;;  %p237_p2 = scmp.lt.s32.totalorder %s1399_s20, 3 }
  0x1e   : > { %s219_s25 = scalar_lea.vmem [#allocation5], %s1001_s6  ;;  %s216_s23 = scalar_lea.sflag [#allocation6], %s1500_s5 }
  0x1f   : > { %s202_s10 = scalar_lea.hbm %s2244_s0, %s1043_s7  ;;  %p238_p3 = pnand %p1009_p1, %p237_p2 }
  0x20   : > { %s203_s13 = sshll.u32 %s202_s10, 4  ;;  %s226_s10 = scalar_lea.hbm %s2206_s1, %s1043_s7  ;;  %s204_s13 = int_to_ptr.hbm [resolvable:$true] %s203_s13 }
  0x21   : > { %1062 = dma.hbm_to_vmem [thread:$0]  (!%p1509_p0), %s204_s13, 2048, %s206_s12, %s192_s24, %s1401_s26, %s1401_s26, %s1402_s22  }
  0x22   : > { %s227_s11 = sshll.u32 %s226_s10, 4  ;;  %s229_s0 = sshll.u32 %s219_s25, 4  ;;  %s228_s11 = int_to_ptr.hbm [resolvable:$true] %s227_s11  ;;  %s230_s0 = int_to_ptr.vmem [resolvable:$true] %s229_s0 }
  0x23   : > { %1065 = dma.hbm_to_vmem [thread:$0]  (!%p1509_p0), %s228_s11, 2048, %s230_s0, %s216_s23, %s1401_s26, %s1401_s26, %s1402_s22  }
  0x24   : > { %241 = sbr.rel (%p238_p3) target bundleno = 161 (0xa1), region = 28 }
  0x29   : > { %s1525_s19 = sand.u32 1, %s1383_s16  }
  0x2a   : > { %s1010_s12 = sshll.u32 %s1525_s19, 7  ;;  %s244_s13 = scalar_lea.sflag [#allocation3], %s1525_s19 }
  0x2b   : > { %s1529_s24 = scalar_lea.vmem [#allocation2], %s1010_s12 }
  0x2c   : > { %1362 = dma.done.wait (%p1480_p8), %s244_s13, 2048  }
  0x2d   : > { %1364 = vsyncadd (%p1480_p8), %s244_s13, 4294965248  ;;  %s254_s5 = scalar_lea.sflag [#allocation6], %s1525_s19  ;;  %s1536_s0 = scalar_lea.vmem [#allocation5], %s1010_s12 }
  0x2e   : > { %1366 = dma.done.wait (%p1480_p8), %s254_s5, 2048  }
  0x2f   : > { %1368 = vsyncadd (%p1480_p8), %s254_s5, 4294965248  ;;  %v1543_v0 = vld [vmem:[%s1529_s24] sm:$0xff]  ;;  %v1586_v18 = vld [vmem:[%s1529_s24 + $0x8] sm:$0xff]  ;;  %s1624_s22 = sshll.u32 %s1525_s19, 5  ;;  %s1800_s27 = sshll.u32 %s1391_s18, 5 }
  0x30   : > { %v1546_v1 = vld [vmem:[%s1529_s24 + $0x20] sm:$0xff]  ;;  %v398_v6 = vand.u32 2147483647, %v1543_v0  ;;  %vm622_vm0 = vcmp.gt.f32.partialorder %v1543_v0, 0.0  ;;  %2251 = vst [vmem:[#allocation22_spill] sm:$0xff] %v1586_v18  ;;  %v1589_v19 = vld [vmem:[%s1536_s0 + $0x8] sm:$0xff]  ;;  %s811_s7 = scalar_lea.hbm %s2208_s3, %s1800_s27 }
  0x31   : > { %v1549_v2 = vld [vmem:[%s1529_s24 + $0x40] sm:$0xff]  ;;  %v402_v9 = vand.u32 2147483647, %v1546_v1  ;;  %vm626_vm1 = vcmp.gt.f32.partialorder %v1546_v1, 0.0  ;;  %2252 = vst [vmem:[#allocation23_spill] sm:$0xff] %v1589_v19  ;;  %v1596_v23 = vld [vmem:[%s1529_s24 + $0x28] sm:$0xff]  ;;  %v1631_v37 = vmul.f32 %v1589_v19, %v1586_v18 }
  0x32   : > { %v1552_v3 = vld [vmem:[%s1529_s24 + $0x60] sm:$0xff]  ;;  %v406_v10 = vand.u32 2147483647, %v1549_v2  ;;  %v414_v15 = vsub.f32 0.0, %v398_v6  ;;  %vm630_vm2 = vcmp.gt.f32.partialorder %v1549_v2, 0.0  ;;  %2253 = vst [vmem:[#allocation24_spill] sm:$0xff] %v1596_v23 }
  0x33   : > { %2246 = vst [vmem:[#allocation17_spill] sm:$0xff] %v1552_v3  ;;  %v1555_v4 = vld [vmem:[%s1536_s0] sm:$0xff]  ;;  %v410_v14 = vand.u32 2147483647, %v1552_v3  ;;  %v418_v16 = vsub.f32 0.0, %v402_v9  ;;  %vm634_vm3 = vcmp.gt.f32.partialorder %v1552_v3, 0.0 }
  0x34   : > { %2247 = vst [vmem:[#allocation18_spill] sm:$0xff] %v1555_v4  ;;  %v1558_v5 = vld [vmem:[%s1536_s0 + $0x20] sm:$0xff]  ;;  %v1566_v8 = vmul.f32 %v1555_v4, %v1543_v0  ;;  %v422_v17 = vsub.f32 0.0, %v406_v10  ;;  %v430_v21 = vmul.f32 1.442695, %v414_v15  ;;  %v638_v22 = vsel %vm622_vm0, %v1555_v4, 0.0 }
  0x35   : > { %2248 = vst [vmem:[#allocation19_spill] sm:$0xff] %v1558_v5  ;;  %v1562_v7 = vld [vmem:[%s1536_s0 + $0x40] sm:$0xff]  ;;  %v1576_v12 = vmul.f32 %v1558_v5, %v1546_v1  ;;  %v426_v20 = vsub.f32 0.0, %v410_v14  ;;  %v1599_v24 = vld [vmem:[%s1529_s24 + $0x48] sm:$0xff]  ;;  %v438_v26 = vmul.f32 1.442695, %v418_v16 }
  0x36   : > { %2249 = vst [vmem:[#allocation20_spill] sm:$0xff] %v1562_v7  ;;  %v1572_v11 = vld [vmem:[%s1536_s0 + $0x60] sm:$0xff]  ;;  %v1580_v13 = vmul.f32 %v1562_v7, %v1549_v2  ;;  %v1602_v25 = vld [vmem:[%s1536_s0 + $0x28] sm:$0xff]  ;;  %v446_v27 = vmul.f32 1.442695, %v422_v17  ;;  %v642_v28 = vsel %vm626_vm1, %v1558_v5, 0.0  ;;  %1129 = vpow2.f32 %v430_v21 }
  0x37   : > { %2250 = vst [vmem:[#allocation21_spill] sm:$0xff] %v1572_v11  ;;  %v646_v29 = vsel %vm630_vm2, %v1562_v7, 0.0  ;;  %v1612_v30 = vmul.f32 %v1572_v11, %v1552_v3  ;;  %v454_v31 = vmul.f32 1.442695, %v426_v20  ;;  %v730_v32 = vadd.f32 %v642_v28, %v638_v22  ;;  %v1615_v33 = vld [vmem:[%s1529_s24 + $0x68] sm:$0xff]  ;;  %v1653_v51 = vld [vmem:[%s1529_s24 + $0x10] sm:$0xff] }
  0x38   : > { %2254 = vst [vmem:[#allocation25_spill] sm:$0xff] %v1599_v24  ;;  %v1618_v34 = vld [vmem:[%s1536_s0 + $0x48] sm:$0xff]  ;;  %1131 = vpow2.f32 %v438_v26  ;;  %v650_v36 = vsel %vm634_vm3, %v1572_v11, 0.0  ;;  %v1635_v38 = vmul.f32 %v1602_v25, %v1596_v23  ;;  %v399_v41 = vand.u32 2147483647, %v1586_v18  ;;  %v1656_v52 = vld [vmem:[%s1529_s24 + $0x30] sm:$0xff] }
  0x39   : > { %2255 = vst [vmem:[#allocation26_spill] sm:$0xff] %v1602_v25  ;;  %v1621_v35 = vld [vmem:[%s1536_s0 + $0x68] sm:$0xff]  ;;  %1133 = vpow2.f32 %v446_v27  ;;  %v731_v39 = vadd.f32 %v730_v32, %v646_v29  ;;  %v1639_v40 = vmul.f32 %v1618_v34, %v1599_v24  ;;  %v403_v43 = vand.u32 2147483647, %v1596_v23  ;;  %v1659_v53 = vld [vmem:[%s1536_s0 + $0x10] sm:$0xff]  ;;  %s1678_s23 = scalar_lea.vmem [#allocation8], %s1624_s22 }
  0x3a   : > { %2256 = vst [vmem:[#allocation27_spill] sm:$0xff] %v1618_v34  ;;  %v1644_v42 = vmul.f32 %v1621_v35, %v1615_v33  ;;  %v407_v44 = vand.u32 2147483647, %v1599_v24  ;;  %v411_v45 = vand.u32 2147483647, %v1615_v33  ;;  %v415_v47 = vsub.f32 0.0, %v399_v41 }
  0x3b   : > { %2257 = vst [vmem:[#allocation28_spill] sm:$0xff] %v1621_v35  ;;  %v732_v46 = vadd.f32 %v731_v39, %v650_v36  ;;  %vm623_vm4 = vcmp.gt.f32.partialorder %v1586_v18, 0.0  ;;  %vm627_vm5 = vcmp.gt.f32.partialorder %v1596_v23, 0.0  ;;  %v419_v48 = vsub.f32 0.0, %v403_v43  ;;  %v1668_v57 = vld [vmem:[%s1536_s0 + $0x30] sm:$0xff]  ;;  %s779_s14 = sand.u32 1, %s1460_s21  }
  0x3c   : > { %v423_v49 = vsub.f32 0.0, %v407_v44  ;;  %v427_v50 = vsub.f32 0.0, %v411_v45  ;;  %vm631_vm6 = vcmp.gt.f32.partialorder %v1599_v24, 0.0  ;;  %2258 = vst [vmem:[#allocation29_spill] sm:$0xff] %v1659_v53  ;;  %v1661_v54 = vpop.eup %1129  ;;  %v432_v55 = vmul.f32 1.442695, %v415_v47 }
  0x3d   : > { %vm635_vm7 = vcmp.gt.f32.partialorder %v1615_v33, 0.0  ;;  %v639_v56 = vsel %vm623_vm4, %v1589_v19, 0.0  ;;  %2259 = vst [vmem:[#allocation30_spill] sm:$0xff] %v1668_v57  ;;  %v1671_v58 = vld [vmem:[%s1536_s0 + $0x50] sm:$0xff]  ;;  %1135 = vpow2.f32 %v454_v31  ;;  %v440_v60 = vmul.f32 1.442695, %v419_v48 }
  0x3e   : > { %2260 = vst [vmem:[#allocation31_spill] sm:$0xff] %v1671_v58  ;;  %v1673_v59 = vpop.eup %1131  ;;  %v448_v61 = vmul.f32 1.442695, %v423_v49  ;;  %v456_v62 = vmul.f32 1.442695, %v427_v50  ;;  %1137 = vpow2.f32 %v432_v55  ;;  %v643_v6 = vsel %vm627_vm5, %v1602_v25, 0.0 }
  0x3f   : > { %v1675_v63 = vpop.eup %1133  ;;  %746 = vst [vmem:[%s1678_s23] sm:$0xff] %v732_v46  ;;  %v647_v9 = vsel %vm631_vm6, %v1618_v34, 0.0  ;;  %v1688_v10 = vld [vmem:[%s1529_s24 + $0x50] sm:$0xff]  ;;  %v1698_v16 = vmul.f32 %v1659_v53, %v1653_v51  ;;  %1139 = vpow2.f32 %v440_v60  ;;  %v651_v17 = vsel %vm635_vm7, %v1621_v35, 0.0  ;;  %v1725_v46 = vld [vmem:[%s1536_s0 + $0x18] sm:$0xff]  ;;  %s813_s26 = sshll.u32 %s1678_s23, 4  ;;  %s1840_s8 = sshll.u32 %s811_s7, 4  ;;  %s1858_s26 = int_to_ptr.vmem [resolvable:$true] %s813_s26  ;;  %s816_s8 = int_to_ptr.hbm [resolvable:$true] %s1840_s8 }
  0x40   : > { %v1691_v14 = vld [vmem:[%s1529_s24 + $0x70] sm:$0xff]  ;;  %v733_v20 = vadd.f32 %v643_v6, %v639_v56  ;;  %v1705_v21 = vmul.f32 %v1668_v57, %v1656_v52  ;;  %1141 = vpow2.f32 %v448_v61  ;;  %v1709_v22 = vmul.f32 %v1671_v58, %v1688_v10  ;;  %2262 = vst [vmem:[#allocation33_spill] sm:$0xff] %v1725_v46  ;;  %v1728_v47 = vld [vmem:[%s1536_s0 + $0x38] sm:$0xff]  ;;  %s1881_s9 = scalar_lea.sflag [#allocation9], %s779_s14  ;;  %s1267_s10 = sshra.s32 %s816_s8, 4  ;;  %s1268_s10 = int_to_ptr.hbm [resolvable:$true] %s1267_s10 }
  0x41   : > { %v1694_v15 = vld [vmem:[%s1536_s0 + $0x70] sm:$0xff]  ;;  %v400_v26 = vand.u32 2147483647, %v1653_v51  ;;  %v404_v27 = vand.u32 2147483647, %v1656_v52  ;;  %vm624_vm8 = vcmp.gt.f32.partialorder %v1653_v51, 0.0  ;;  %1143 = vpow2.f32 %v456_v62  ;;  %p1274_p7 = scmp.lt.s32.totalorder %s1268_s10, %s2208_s3 }
  0x42   : > { %2261 = vst [vmem:[#allocation32_spill] sm:$0xff] %v1694_v15  ;;  %v734_v28 = vadd.f32 %v733_v20, %v647_v9  ;;  %v1715_v29 = vmul.f32 %v1694_v15, %v1691_v14  ;;  %v408_v31 = vand.u32 2147483647, %v1688_v10  ;;  %v412_v32 = vand.u32 2147483647, %v1691_v14  ;;  %v1742_v6 = vld [vmem:[%s1529_s24 + $0x18] sm:$0xff] }
  0x43   : > { %v416_v36 = vsub.f32 0.0, %v400_v26  ;;  %v420_v39 = vsub.f32 0.0, %v404_v27  ;;  %vm628_vm9 = vcmp.gt.f32.partialorder %v1656_v52, 0.0  ;;  %v1721_v41 = vpop.eup %1135  ;;  %vm632_vm10 = vcmp.gt.f32.partialorder %v1688_v10, 0.0  ;;  %2263 = vst [vmem:[#allocation34_spill] sm:$0xff] %v1728_v47  ;;  %v1745_v9 = vld [vmem:[%s1529_s24 + $0x38] sm:$0xff] }
  0x44   : > { %v735_v43 = vadd.f32 %v734_v28, %v651_v17  ;;  %v424_v44 = vsub.f32 0.0, %v408_v31  ;;  %v428_v45 = vsub.f32 0.0, %v412_v32  ;;  %v1730_v48 = vpop.eup %1137  ;;  %vm636_vm11 = vcmp.gt.f32.partialorder %v1691_v14, 0.0  ;;  %v1748_v17 = vld [vmem:[%s1536_s0 + $0x58] sm:$0xff]  ;;  %s1269_s11 = scalar_lea.hbm %s1268_s10, 32  ;;  %s1273_s13 = scalar_lea.hbm %s2208_s3, 64 }
  0x45   : > { %v434_v49 = vmul.f32 1.442695, %v416_v36  ;;  %v442_v50 = vmul.f32 1.442695, %v420_v39  ;;  %v640_v55 = vsel %vm624_vm8, %v1659_v53, 0.0  ;;  %v1736_v56 = vpop.eup %1139  ;;  %v644_v61 = vsel %vm628_vm9, %v1668_v57, 0.0  ;;  %p1270_p4 = scmp.ne.s32.totalorder %s1268_s10, %s1269_s11  ;;  %p1275_p8 = scmp.lt.s32.totalorder %s1273_s13, %s1269_s11 }
  0x46   : > { %v450_v60 = vmul.f32 1.442695, %v424_v44  ;;  %2264 = vst [vmem:[#allocation35_spill] sm:$0xff] %v1748_v17  ;;  %v1750_v20 = vpop.eup %1141  ;;  %v458_v26 = vmul.f32 1.442695, %v428_v45  ;;  %v648_v27 = vsel %vm632_vm10, %v1671_v58, 0.0  ;;  %v736_v62 = vadd.f32 %v644_v61, %v640_v55 }
  0x47   : > { %1145 = vpow2.f32 %v434_v49  ;;  %v1756_v28 = vld [vmem:[%s1529_s24 + $0x58] sm:$0xff]  ;;  %747 = vst [vmem:[%s1678_s23 + $0x8] sm:$0xff] %v735_v43  ;;  %v652_v36 = vsel %vm636_vm11, %v1694_v15, 0.0  ;;  %v1770_v39 = vmul.f32 %v1725_v46, %v1742_v6  ;;  %v1774_v44 = vmul.f32 %v1728_v47, %v1745_v9  ;;  %p1271_p5 = pnand %p1270_p4, %p1484_p9  ;;  %p1276_p10 = por %p1275_p8, %p1274_p7 }
  0x48   : > { %v1759_v31 = vld [vmem:[%s1529_s24 + $0x78] sm:$0xff]  ;;  %1147 = vpow2.f32 %v442_v50  ;;  %v737_v45 = vadd.f32 %v736_v62, %v648_v27  ;;  %v1778_v49 = vmul.f32 %v1748_v17, %v1756_v28  ;;  %v401_v43 = vand.u32 2147483647, %v1742_v6  ;;  %v1790_v27 = vpop.eup %1143 }
  0x49   : > { %v1762_v32 = vld [vmem:[%s1536_s0 + $0x78] sm:$0xff]  ;;  %1149 = vpow2.f32 %v450_v60  ;;  %v405_v55 = vand.u32 2147483647, %v1745_v9  ;;  %v409_v61 = vand.u32 2147483647, %v1756_v28  ;;  %vm2230_vm12 = vcmp.gt.f32.partialorder %v1742_v6, 0.0  ;;  %p1272_p6 = pneg %p1271_p5 }
  0x4a   : > { %2265 = vst [vmem:[#allocation36_spill] sm:$0xff] %v1762_v32  ;;  %v1783_v50 = vmul.f32 %v1762_v32, %v1759_v31  ;;  %v413_v15 = vand.u32 2147483647, %v1759_v31  ;;  %v738_v58 = vadd.f32 %v737_v45, %v652_v36  ;;  %v417_v60 = vsub.f32 0.0, %v401_v43 }
  0x4b   : > { %vm2229_vm13 = vcmp.gt.f32.partialorder %v1745_v9, 0.0  ;;  %v421_v62 = vsub.f32 0.0, %v405_v55  ;;  %v425_v57 = vsub.f32 0.0, %v409_v61  ;;  %vm2224_vm14 = vcmp.gt.f32.partialorder %v1756_v28, 0.0  ;;  %p1277_p13 = pnand %p1276_p10, %p1272_p6 }
  0x4c   : > { %v429_v53 = vsub.f32 0.0, %v413_v15  ;;  %v436_v34 = vmul.f32 1.442695, %v417_v60  ;;  %vm2223_vm15 = vcmp.gt.f32.partialorder %v1759_v31, 0.0  ;;  %v641_v36 = vsel %vm2230_vm12, %v1725_v46, 0.0  ;;  %748 = vst [vmem:[%s1678_s23 + $0x10] sm:$0xff] %v738_v58 }
  0x4d   : > { %v1793_v35 = vpop.eup %1145  ;;  %1151 = vpow2.f32 %v458_v26  ;;  %v444_v43 = vmul.f32 1.442695, %v421_v62  ;;  %v452_v55 = vmul.f32 1.442695, %v425_v57  ;;  %v645_v60 = vsel %vm2229_vm13, %v1728_v47, 0.0 }
  0x4e   : > { %v1802_v45 = vpop.eup %1147  ;;  %v460_v15 = vmul.f32 1.442695, %v429_v53  ;;  %1153 = vpow2.f32 %v436_v34  ;;  %v649_v46 = vsel %vm2224_vm14, %v1748_v17, 0.0  ;;  %v653_v26 = vsel %vm2223_vm15, %v1762_v32, 0.0 }
  0x4f   : > { %v1804_v61 = vpop.eup %1149  ;;  %1155 = vpow2.f32 %v444_v43  ;;  %v739_v57 = vadd.f32 %v645_v60, %v641_v36  ;;  %v350_v53 = vmax.f32 %v1543_v0, 0.0  ;;  %v354_v34 = vmax.f32 %v1546_v1, 0.0 }
  0x50   : > { %1157 = vpow2.f32 %v452_v55  ;;  %v358_v58 = vmax.f32 %v1549_v2, 0.0  ;;  %v362_v62 = vmax.f32 %v1552_v3, 0.0  ;;  %v462_v17 = vadd.f32 1.0, %v1661_v54 }
  0x51   : > { %1159 = vpow2.f32 %v460_v15  ;;  %v740_v32 = vadd.f32 %v739_v57, %v649_v46  ;;  %v1826_v36 = vsub.f32 %v350_v53, %v1566_v8  ;;  %v1829_v43 = vsub.f32 %v354_v34, %v1576_v12 }
  0x52   : > { %v1833_v60 = vsub.f32 %v358_v58, %v1580_v13  ;;  %v1836_v55 = vsub.f32 %v362_v62, %v1612_v30  ;;  %1161 = vlog2.f32 %v462_v17  ;;  %v465_v47 = vmul.f32 -0.5, %v1661_v54 }
  0x53   : > { %v1842_v46 = vpop.eup %1151  ;;  %v741_v8 = vadd.f32 %v740_v32, %v653_v26  ;;  %v468_v12 = vand.u32 2147483647, %v1661_v54  ;;  %v498_v15 = vadd.f32 1.0, %v1673_v59  ;;  %v501_v13 = vmul.f32 -0.5, %v1673_v59 }
  0x54   : > { %v1847_v57 = vpop.eup %1153  ;;  %v466_v30 = vadd.f32 1.0, %v465_v47  ;;  %v504_v17 = vand.u32 2147483647, %v1673_v59  ;;  %v534_v53 = vadd.f32 1.0, %v1675_v63  ;;  %v537_v34 = vmul.f32 -0.5, %v1675_v63 }
  0x55   : > { %v1852_v58 = vpop.eup %1155  ;;  %vm1854_vm15 = vcmp.lt.f32.partialorder %v468_v12, 0.0004427343  ;;  %1163 = vlog2.f32 %v498_v15  ;;  %v502_v26 = vadd.f32 1.0, %v501_v13  ;;  %749 = vst [vmem:[%s1678_s23 + $0x18] sm:$0xff] %v741_v8  ;;  %v540_v13 = vand.u32 2147483647, %v1675_v63 }
  0x56   : > { %v1861_v62 = vpop.eup %1157  ;;  %v467_v47 = vmul.f32 %v1661_v54, %v466_v30  ;;  %vm1864_vm14 = vcmp.lt.f32.partialorder %v504_v17, 0.0004427343  ;;  %1165 = vlog2.f32 %v534_v53  ;;  %v538_v12 = vadd.f32 1.0, %v537_v34 }
  0x57   : > { %v1868_v19 = vpop.eup %1159  ;;  %v503_v15 = vmul.f32 %v1673_v59, %v502_v26  ;;  %v570_v11 = vadd.f32 1.0, %v1721_v41  ;;  %v573_v7 = vmul.f32 -0.5, %v1721_v41  ;;  %v576_v17 = vand.u32 2147483647, %v1721_v41 }
  0x58   : > { %v1162_v54 = vpop.eup %1161  ;;  %v539_v30 = vmul.f32 %v1675_v63, %v538_v12  ;;  %v351_v53 = vmax.f32 %v1586_v18, 0.0  ;;  %v355_v34 = vmax.f32 %v1596_v23, 0.0 }
  0x59   : > { %1280 = shalt.err (!%p1277_p13)
}
  0x5a   : > { %1054 = dma.vmem_to_hbm [thread:$0]  (%p1484_p9), %s1858_s26, 512, %s816_s8, %s1881_s9   ;;  %v464_v59 = vmul.f32 0.6931472, %v1162_v54  ;;  %vm1899_vm13 = vcmp.lt.f32.partialorder %v540_v13, 0.0004427343  ;;  %1167 = vlog2.f32 %v570_v11  ;;  %v574_v8 = vadd.f32 1.0, %v573_v7 }
  0x5b   : > { %vm1903_vm12 = vcmp.lt.f32.partialorder %v576_v17, 0.0004427343  ;;  %v359_v12 = vmax.f32 %v1599_v24, 0.0  ;;  %v363_v23 = vmax.f32 %v1615_v33, 0.0  ;;  %v383_v18 = vsub.f32 %v351_v53, %v1631_v37  ;;  %v1164_v5 = vpop.eup %1163  ;;  %s1972_s21 = scalar_lea.vmem [#allocation7], %s1624_s22  ;;  %v2301_v1 = vld [vmem:[#allocation20_spill] sm:$0xff]  ;;  %s796_s18 = scalar_lea.hbm %s2207_s2, %s1800_s27 }
  0x5c   : > { %v470_v54 = vsel %vm1854_vm15, %v467_v47, %v464_v59  ;;  %v575_v13 = vmul.f32 %v1721_v41, %v574_v8  ;;  %v1914_v4 = vsub.f32 %v355_v34, %v1635_v38  ;;  %v471_v7 = vadd.f32 1.0, %v1730_v48  ;;  %v1166_v11 = vpop.eup %1165  ;;  %s798_s6 = sshll.u32 %s1972_s21, 4  ;;  %s2128_s7 = sshll.u32 %s796_s18, 4  ;;  %s799_s6 = int_to_ptr.vmem [resolvable:$true] %s798_s6  ;;  %s801_s7 = int_to_ptr.hbm [resolvable:$true] %s2128_s7 }
  0x5d   : > { %v500_v17 = vmul.f32 0.6931472, %v1164_v5  ;;  %v606_v3 = vadd.f32 %v470_v54, %v1826_v36  ;;  %v1919_v24 = vsub.f32 %v359_v12, %v1639_v40  ;;  %v1922_v37 = vsub.f32 %v363_v23, %v1644_v42  ;;  %s2137_s14 = scalar_lea.vmem [#allocation10], %s1624_s22  ;;  %s826_s8 = scalar_lea.hbm %s2209_s4, %s1800_s27 }
  0x5e   : > { %v536_v53 = vmul.f32 0.6931472, %v1166_v11  ;;  %1169 = vlog2.f32 %v471_v7  ;;  %v474_v32 = vmul.f32 -0.5, %v1730_v48  ;;  %v477_v41 = vand.u32 2147483647, %v1730_v48  ;;  %s775_s10 = scalar_lea.sflag [#allocation4], %s1525_s19 }
  0x5f   : > { %v506_v38 = vsel %vm1864_vm14, %v503_v15, %v500_v17  ;;  %v507_v47 = vadd.f32 1.0, %v1736_v56  ;;  %v510_v5 = vmul.f32 -0.5, %v1736_v56  ;;  %v513_v36 = vand.u32 2147483647, %v1736_v56  ;;  %s1295_s11 = sshra.s32 %s801_s7, 4  ;;  %s1301_s24 = scalar_lea.hbm %s2207_s2, 64  ;;  %s1296_s11 = int_to_ptr.hbm [resolvable:$true] %s1295_s11 }
  0x60   : > { %v1168_v40 = vpop.eup %1167  ;;  %v542_v23 = vsel %vm1899_vm13, %v539_v30, %v536_v53  ;;  %v610_v42 = vadd.f32 %v506_v38, %v1829_v43  ;;  %v475_v34 = vadd.f32 1.0, %v474_v32  ;;  %vm1934_vm15 = vcmp.lt.f32.partialorder %v477_v41, 0.0004427343  ;;  %s1297_s25 = scalar_lea.hbm %s1296_s11, 32  ;;  %p1302_p3 = scmp.lt.s32.totalorder %s1296_s11, %s2207_s2 }
  0x61   : > { %v572_v8 = vmul.f32 0.6931472, %v1168_v40  ;;  %v614_v25 = vadd.f32 %v542_v23, %v1833_v60  ;;  %1171 = vlog2.f32 %v507_v47  ;;  %v511_v15 = vadd.f32 1.0, %v510_v5  ;;  %p1298_p0 = scmp.ne.s32.totalorder %s1296_s11, %s1297_s25  ;;  %p1303_p4 = scmp.lt.s32.totalorder %s1301_s24, %s1297_s25 }
  0x62   : > { %v706_v12 = vadd.f32 %v610_v42, %v606_v3  ;;  %v476_v54 = vmul.f32 %v1730_v48, %v475_v34  ;;  %vm1940_vm14 = vcmp.lt.f32.partialorder %v513_v36, 0.0004427343  ;;  %v543_v30 = vadd.f32 1.0, %v1750_v20 }
  0x63   : > { %v578_v43 = vsel %vm1903_vm12, %v575_v13, %v572_v8  ;;  %v512_v63 = vmul.f32 %v1736_v56, %v511_v15  ;;  %v546_v11 = vmul.f32 -0.5, %v1750_v20  ;;  %v549_v60 = vand.u32 2147483647, %v1750_v20  ;;  %p1299_p1 = pnand %p1298_p0, %p1484_p9  ;;  %p1304_p5 = por %p1303_p4, %p1302_p3 }
  0x64   : > { %v1170_v17 = vpop.eup %1169  ;;  %v618_v3 = vadd.f32 %v578_v43, %v1836_v55  ;;  %v707_v53 = vadd.f32 %v706_v12, %v614_v25  ;;  %1173 = vlog2.f32 %v543_v30  ;;  %v579_v48 = vadd.f32 1.0, %v1790_v27 }
  0x65   : > { %v473_v32 = vmul.f32 0.6931472, %v1170_v17  ;;  %v547_v41 = vadd.f32 1.0, %v546_v11  ;;  %vm1952_vm13 = vcmp.lt.f32.partialorder %v549_v60, 0.0004427343  ;;  %v582_v26 = vmul.f32 -0.5, %v1790_v27  ;;  %p1300_p2 = pneg %p1299_p1 }
  0x66   : > { %v708_v56 = vadd.f32 %v707_v53, %v618_v3  ;;  %1175 = vlog2.f32 %v579_v48  ;;  %v585_v13 = vand.u32 2147483647, %v1790_v27  ;;  %v352_v47 = vmax.f32 %v1653_v51, 0.0 }
  0x67   : > { %v1172_v55 = vpop.eup %1171  ;;  %v479_v5 = vsel %vm1934_vm15, %v476_v54, %v473_v32  ;;  %v548_v36 = vmul.f32 %v1750_v20, %v547_v41  ;;  %v583_v40 = vadd.f32 1.0, %v582_v26  ;;  %v356_v23 = vmax.f32 %v1656_v52, 0.0  ;;  %p1305_p6 = pnand %p1304_p5, %p1300_p2 }
  0x68   : > { %v509_v42 = vmul.f32 0.6931472, %v1172_v55  ;;  %vm1963_vm12 = vcmp.lt.f32.partialorder %v585_v13, 0.0004427343  ;;  %v607_v8 = vadd.f32 %v479_v5, %v383_v18  ;;  %v360_v15 = vmax.f32 %v1688_v10, 0.0  ;;  %722 = vst [vmem:[%s1972_s21] sm:$0xff] %v708_v56 }
  0x69   : > { %v584_v25 = vmul.f32 %v1790_v27, %v583_v40  ;;  %v364_v12 = vmax.f32 %v1691_v14, 0.0  ;;  %v384_v59 = vsub.f32 %v352_v47, %v1698_v16  ;;  %v388_v30 = vsub.f32 %v356_v23, %v1705_v21 }
  0x6a   : > { %v1174_v54 = vpop.eup %1173  ;;  %v515_v20 = vsel %vm1940_vm14, %v512_v63, %v509_v42  ;;  %v480_v18 = vadd.f32 1.0, %v1793_v35  ;;  %v483_v27 = vmul.f32 -0.5, %v1793_v35  ;;  %v1982_v60 = vsub.f32 %v360_v15, %v1709_v22 }
  0x6b   : > { %v545_v43 = vmul.f32 0.6931472, %v1174_v54  ;;  %v611_v11 = vadd.f32 %v515_v20, %v1914_v4  ;;  %v1985_v16 = vsub.f32 %v364_v12, %v1715_v29  ;;  %v486_v7 = vand.u32 2147483647, %v1793_v35 }
  0x6c   : > { %v1176_v17 = vpop.eup %1175  ;;  %1177 = vlog2.f32 %v480_v18  ;;  %v484_v3 = vadd.f32 1.0, %v483_v27  ;;  %v516_v21 = vadd.f32 1.0, %v1802_v45  ;;  %v519_v4 = vmul.f32 -0.5, %v1802_v45 }
  0x6d   : > { %v551_v63 = vsel %vm1952_vm13, %v548_v36, %v545_v43  ;;  %v581_v53 = vmul.f32 0.6931472, %v1176_v17  ;;  %v709_v48 = vadd.f32 %v611_v11, %v607_v8  ;;  %vm1994_vm15 = vcmp.lt.f32.partialorder %v486_v7, 0.0004427343 }
  0x6e   : > { %v615_v22 = vadd.f32 %v551_v63, %v1919_v24  ;;  %v485_v32 = vmul.f32 %v1793_v35, %v484_v3  ;;  %1179 = vlog2.f32 %v516_v21  ;;  %v520_v26 = vadd.f32 1.0, %v519_v4 }
  0x6f   : > { %v587_v41 = vsel %vm1963_vm12, %v584_v25, %v581_v53  ;;  %v522_v38 = vand.u32 2147483647, %v1802_v45  ;;  %v552_v56 = vadd.f32 1.0, %v1804_v61  ;;  %v555_v24 = vmul.f32 -0.5, %v1804_v61 }
  0x70   : > { %v619_v13 = vadd.f32 %v587_v41, %v1922_v37  ;;  %v710_v47 = vadd.f32 %v709_v48, %v615_v22  ;;  %v558_v35 = vand.u32 2147483647, %v1804_v61  ;;  %v521_v55 = vmul.f32 %v1802_v45, %v520_v26 }
  0x71   : > { %vm2006_vm14 = vcmp.lt.f32.partialorder %v522_v38, 0.0004427343  ;;  %1181 = vlog2.f32 %v552_v56  ;;  %v588_v36 = vadd.f32 1.0, %v1842_v46  ;;  %v556_v42 = vadd.f32 1.0, %v555_v24 }
  0x72   : > { %v1178_v40 = vpop.eup %1177  ;;  %v711_v23 = vadd.f32 %v710_v47, %v619_v13  ;;  %vm2011_vm13 = vcmp.lt.f32.partialorder %v558_v35, 0.0004427343  ;;  %v591_v34 = vmul.f32 -0.5, %v1842_v46  ;;  %v594_v45 = vand.u32 2147483647, %v1842_v46 }
  0x73   : > { %v482_v8 = vmul.f32 0.6931472, %v1178_v40  ;;  %1183 = vlog2.f32 %v588_v36  ;;  %v353_v25 = vmax.f32 %v1742_v6, 0.0  ;;  %v557_v12 = vmul.f32 %v1804_v61, %v556_v42 }
  0x74   : > { %v1180_v15 = vpop.eup %1179  ;;  %v592_v54 = vadd.f32 1.0, %v591_v34  ;;  %v357_v20 = vmax.f32 %v1745_v9, 0.0  ;;  %vm2022_vm12 = vcmp.lt.f32.partialorder %v594_v45, 0.0004427343  ;;  %v361_v11 = vmax.f32 %v1756_v28, 0.0  ;;  %723 = vst [vmem:[%s1972_s21 + $0x8] sm:$0xff] %v711_v23 }
  0x75   : > { %v488_v18 = vsel %vm1994_vm15, %v485_v32, %v482_v8  ;;  %v518_v27 = vmul.f32 0.6931472, %v1180_v15  ;;  %v365_v7 = vmax.f32 %v1759_v31, 0.0  ;;  %v385_v61 = vsub.f32 %v353_v25, %v1770_v39 }
  0x76   : > { %v593_v17 = vmul.f32 %v1842_v46, %v592_v54  ;;  %v608_v3 = vadd.f32 %v488_v18, %v384_v59  ;;  %v389_v53 = vsub.f32 %v357_v20, %v1774_v44  ;;  %v2035_v48 = vsub.f32 %v361_v11, %v1778_v49 }
  0x77   : > { %v1182_v21 = vpop.eup %1181  ;;  %v524_v63 = vsel %vm2006_vm14, %v521_v55, %v518_v27  ;;  %v489_v4 = vadd.f32 1.0, %v1847_v57  ;;  %v2039_v46 = vsub.f32 %v365_v7, %v1783_v50  ;;  %v492_v59 = vmul.f32 -0.5, %v1847_v57 }
  0x78   : > { %v554_v22 = vmul.f32 0.6931472, %v1182_v21  ;;  %v612_v32 = vadd.f32 %v524_v63, %v388_v30  ;;  %v495_v39 = vand.u32 2147483647, %v1847_v57  ;;  %v525_v41 = vadd.f32 1.0, %v1852_v58  ;;  %v2299_v63 = vld [vmem:[#allocation18_spill] sm:$0xff] }
  0x79   : > { %v1184_v29 = vpop.eup %1183  ;;  %1185 = vlog2.f32 %v489_v4  ;;  %v528_v44 = vmul.f32 -0.5, %v1852_v58  ;;  %v493_v56 = vadd.f32 1.0, %v492_v59  ;;  %v531_v35 = vand.u32 2147483647, %v1852_v58  ;;  %v2300_v59 = vld [vmem:[#allocation19_spill] sm:$0xff] }
  0x7a   : > { %v560_v49 = vsel %vm2011_vm13, %v557_v12, %v554_v22  ;;  %v590_v26 = vmul.f32 0.6931472, %v1184_v29  ;;  %v712_v38 = vadd.f32 %v612_v32, %v608_v3  ;;  %vm2048_vm15 = vcmp.lt.f32.partialorder %v495_v39, 0.0004427343 }
  0x7b   : > { %v616_v30 = vadd.f32 %v560_v49, %v1982_v60  ;;  %1187 = vlog2.f32 %v525_v41  ;;  %v529_v13 = vadd.f32 1.0, %v528_v44  ;;  %v494_v24 = vmul.f32 %v1847_v57, %v493_v56  ;;  %v2302_v41 = vld [vmem:[#allocation21_spill] sm:$0xff] }
  0x7c   : > { %v596_v47 = vsel %vm2022_vm12, %v593_v17, %v590_v26  ;;  %v561_v55 = vadd.f32 1.0, %v1861_v62  ;;  %v564_v40 = vmul.f32 -0.5, %v1861_v62  ;;  %vm2060_vm14 = vcmp.lt.f32.partialorder %v531_v35, 0.0004427343 }
  0x7d   : > { %v620_v5 = vadd.f32 %v596_v47, %v1985_v16  ;;  %v713_v36 = vadd.f32 %v712_v38, %v616_v30  ;;  %v530_v60 = vmul.f32 %v1852_v58, %v529_v13  ;;  %v567_v42 = vand.u32 2147483647, %v1861_v62 }
  0x7e   : > { %1189 = vlog2.f32 %v561_v55  ;;  %v597_v57 = vadd.f32 1.0, %v1868_v19  ;;  %v565_v8 = vadd.f32 1.0, %v564_v40  ;;  %v600_v16 = vmul.f32 -0.5, %v1868_v19 }
  0x7f   : > { %v1186_v37 = vpop.eup %1185  ;;  %v714_v34 = vadd.f32 %v713_v36, %v620_v5  ;;  %v603_v45 = vand.u32 2147483647, %v1868_v19  ;;  %vm2068_vm13 = vcmp.lt.f32.partialorder %v567_v42, 0.0004427343  ;;  %v1403_v15 = vmov 0.0   ;;  %v2307_v36 = vld [vmem:[#allocation26_spill] sm:$0xff] }
  0x80   : > { %v491_v58 = vmul.f32 0.6931472, %v1186_v37  ;;  %1191 = vlog2.f32 %v597_v57  ;;  %v1015_v12 = vsel %vm622_vm0, 1.0, %v1403_v15  ;;  %v566_v20 = vmul.f32 %v1861_v62, %v565_v8  ;;  %v2308_v42 = vld [vmem:[#allocation27_spill] sm:$0xff]  ;;  %v2309_v37 = vld [vmem:[#allocation28_spill] sm:$0xff] }
  0x81   : > { %v1188_v54 = vpop.eup %1187  ;;  %v601_v18 = vadd.f32 1.0, %v600_v16  ;;  %vm2075_vm12 = vcmp.lt.f32.partialorder %v603_v45, 0.0004427343  ;;  %v1019_v17 = vsel %vm626_vm1, 1.0, %v1403_v15  ;;  %v1023_v3 = vsel %vm630_vm2, 1.0, %v1403_v15  ;;  %724 = vst [vmem:[%s1972_s21 + $0x10] sm:$0xff] %v714_v34 }
  0x82   : > { %v497_v43 = vsel %vm2048_vm15, %v494_v24, %v491_v58  ;;  %v527_v11 = vmul.f32 0.6931472, %v1188_v54  ;;  %v1027_v21 = vsel %vm634_vm3, 1.0, %v1403_v15  ;;  %v686_v4 = vadd.f32 %v1015_v12, %v2299_v63  ;;  %v2306_v24 = vld [vmem:[#allocation23_spill] sm:$0xff]  ;;  %v2318_v63 = vld [vmem:[#allocation33_spill] sm:$0xff] }
  0x83   : > { %v602_v0 = vmul.f32 %v1868_v19, %v601_v18  ;;  %v609_v7 = vadd.f32 %v497_v43, %v385_v61  ;;  %v690_v29 = vadd.f32 %v1019_v17, %v2300_v59  ;;  %v694_v39 = vadd.f32 %v1023_v3, %v2301_v1  ;;  %v2310_v18 = vld [vmem:[#allocation29_spill] sm:$0xff]  ;;  %v2311_v43 = vld [vmem:[#allocation30_spill] sm:$0xff]  ;;  %v2313_v17 = vld [vmem:[#allocation32_spill] sm:$0xff] }
  0x84   : > { %v1190_v22 = vpop.eup %1189  ;;  %v533_v32 = vsel %vm2060_vm14, %v530_v60, %v527_v11  ;;  %v698_v2 = vadd.f32 %v1027_v21, %v2302_v41  ;;  %v1016_v19 = vsel %vm623_vm4, 1.0, %v1403_v15  ;;  %v1020_v38 = vsel %vm627_vm5, 1.0, %v1403_v15 }
  0x85   : > { %v563_v44 = vmul.f32 0.6931472, %v1190_v22  ;;  %v613_v49 = vadd.f32 %v533_v32, %v389_v53  ;;  %v754_v30 = vadd.f32 %v690_v29, %v686_v4  ;;  %v1024_v13 = vsel %vm631_vm6, 1.0, %v1403_v15  ;;  %v2320_v32 = vld [vmem:[#allocation35_spill] sm:$0xff]  ;;  %v2321_v29 = vld [vmem:[#allocation36_spill] sm:$0xff] }
  0x86   : > { %v1192_v56 = vpop.eup %1191  ;;  %v1028_v47 = vsel %vm635_vm7, 1.0, %v1403_v15  ;;  %v687_v35 = vadd.f32 %v1016_v19, %v2306_v24  ;;  %v691_v60 = vadd.f32 %v1020_v38, %v2307_v36  ;;  %v695_v57 = vadd.f32 %v1024_v13, %v2308_v42 }
  0x87   : > { %v569_v53 = vsel %vm2068_vm13, %v566_v20, %v563_v44  ;;  %v599_v55 = vmul.f32 0.6931472, %v1192_v56  ;;  %v715_v5 = vadd.f32 %v613_v49, %v609_v7  ;;  %v755_v23 = vadd.f32 %v754_v30, %v694_v39 }
  0x88   : > { %v617_v40 = vadd.f32 %v569_v53, %v2035_v48  ;;  %v699_v34 = vadd.f32 %v1028_v47, %v2309_v37  ;;  %v757_v8 = vadd.f32 %v691_v60, %v687_v35  ;;  %v1017_v16 = vsel %vm624_vm8, 1.0, %v1403_v15 }
  0x89   : > { %v605_v33 = vsel %vm2075_vm12, %v602_v0, %v599_v55  ;;  %v1021_v48 = vsel %vm628_vm9, 1.0, %v1403_v15  ;;  %v756_v25 = vadd.f32 %v755_v23, %v698_v2  ;;  %v1025_v12 = vsel %vm632_vm10, 1.0, %v1403_v15 }
  0x8a   : > { %v621_v45 = vadd.f32 %v605_v33, %v2039_v46  ;;  %v716_v58 = vadd.f32 %v715_v5, %v617_v40  ;;  %v758_v54 = vadd.f32 %v757_v8, %v695_v57  ;;  %v1029_v20 = vsel %vm636_vm11, 1.0, %v1403_v15  ;;  %v2312_v46 = vld [vmem:[#allocation31_spill] sm:$0xff] }
  0x8b   : > { %v688_v27 = vadd.f32 %v1017_v16, %v2310_v18  ;;  %v692_v51 = vadd.f32 %v1021_v48, %v2311_v43  ;;  %v696_v11 = vadd.f32 %v1025_v12, %v2312_v46  ;;  %v700_v3 = vadd.f32 %v1029_v20, %v2313_v17  ;;  %770 = vst [vmem:[%s2137_s14] sm:$0xff] %v756_v25 }
  0x8c   : > { %v717_v52 = vadd.f32 %v716_v58, %v621_v45  ;;  %v759_v10 = vadd.f32 %v758_v54, %v699_v34  ;;  %vm2314_vm0 = vcmp.gt.f32.partialorder %v1742_v6, 0.0  ;;  %vm2315_vm1 = vcmp.gt.f32.partialorder %v1745_v9, 0.0  ;;  %v2319_v9 = vld [vmem:[#allocation34_spill] sm:$0xff] }
  0x8d   : > { %v760_v0 = vadd.f32 %v692_v51, %v688_v27  ;;  %v1018_v14 = vsel %vm2314_vm0, 1.0, %v1403_v15  ;;  %v1022_v7 = vsel %vm2315_vm1, 1.0, %v1403_v15  ;;  %vm2316_vm2 = vcmp.gt.f32.partialorder %v1756_v28, 0.0 }
  0x8e   : > { %v1026_v62 = vsel %vm2316_vm2, 1.0, %v1403_v15  ;;  %vm2317_vm3 = vcmp.gt.f32.partialorder %v1759_v31, 0.0  ;;  %v689_v4 = vadd.f32 %v1018_v14, %v2318_v63  ;;  %v693_v22 = vadd.f32 %v1022_v7, %v2319_v9  ;;  %725 = vst [vmem:[%s1972_s21 + $0x18] sm:$0xff] %v717_v52 }
  0x8f   : > { %v1030_v21 = vsel %vm2317_vm3, 1.0, %v1403_v15  ;;  %v761_v6 = vadd.f32 %v760_v0, %v696_v11  ;;  %v697_v59 = vadd.f32 %v1026_v62, %v2320_v32  ;;  %771 = vst [vmem:[%s2137_s14 + $0x8] sm:$0xff] %v759_v10 }
  0x90   : > { %v701_v31 = vadd.f32 %v1030_v21, %v2321_v29  ;;  %v763_v15 = vadd.f32 %v693_v22, %v689_v4 }
  0x91   : > { %v762_v28 = vadd.f32 %v761_v6, %v700_v3 }
  0x92   : > { %1308 = shalt.err (!%p1305_p6)
}
  0x93   : > { %1053 = dma.vmem_to_hbm [thread:$0]  (%p1484_p9), %s799_s6, 512, %s801_s7, %s775_s10   ;;  %v764_v1 = vadd.f32 %v763_v15, %v697_v59  ;;  %772 = vst [vmem:[%s2137_s14 + $0x10] sm:$0xff] %v762_v28 }
  0x94   : > { %s828_s19 = sshll.u32 %s2137_s14, 4  ;;  %s830_s27 = sshll.u32 %s826_s8, 4  ;;  %s829_s19 = int_to_ptr.vmem [resolvable:$true] %s828_s19  ;;  %s831_s27 = int_to_ptr.hbm [resolvable:$true] %s830_s27 }
  0x95   : > { %v765_v39 = vadd.f32 %v764_v1, %v701_v31  ;;  %s1323_s0 = sshra.s32 %s831_s27, 4  ;;  %s1329_s26 = scalar_lea.hbm %s2209_s4, 64  ;;  %s1324_s0 = int_to_ptr.hbm [resolvable:$true] %s1323_s0 }
  0x96   : > { %s1325_s23 = scalar_lea.hbm %s1324_s0, 32  ;;  %p1330_p13 = scmp.lt.s32.totalorder %s1324_s0, %s2209_s4 }
  0x97   : > { %773 = vst [vmem:[%s2137_s14 + $0x18] sm:$0xff] %v765_v39  ;;  %p1326_p7 = scmp.ne.s32.totalorder %s1324_s0, %s1325_s23  ;;  %p1331_p0 = scmp.lt.s32.totalorder %s1329_s26, %s1325_s23 }
  0x99   : > { %p1327_p8 = pnand %p1326_p7, %p1484_p9  ;;  %p1332_p1 = por %p1331_p0, %p1330_p13 }
  0x9b   : > { %p1328_p10 = pneg %p1327_p8 }
  0x9d   : > { %p1333_p2 = pnand %p1332_p1, %p1328_p10 }
  0x9f   : > { %1336 = shalt.err (!%p1333_p2)
}
  0xa0   : > { %1055 = dma.vmem_to_hbm [thread:$0]  (%p1484_p9), %s829_s19, 512, %s831_s27, %s1881_s9  }
  0xa1 PF: > { %s842_s14 = sand.u32 1, %s1379_s15   ;;  %p1067_p3 = pnand %p1000_p12, %p1493_p11 }
  0xa2   : > { %s843_s8 = scalar_lea.sflag [#allocation4], %s842_s14 }
  0xa3   : > { %p1068_p4 = pneg %p1067_p3 }
  0xa5   : > { %1370 = dma.done.wait (%p1068_p4), %s843_s8, 512  }
  0xa6   : > { %1372 = vsyncadd (%p1068_p4), %s843_s8, 4294966784  ;;  %s2322_s10 = sadd.s32 4294967294, %s1399_s20  }
  0xa7   : > { %s852_s11 = sand.u32 1, %s2322_s10  }
  0xa8   : > { %s853_s25 = scalar_lea.sflag [#allocation9], %s852_s11 }
  0xa9   : > { %1374 = dma.done.wait (%p1068_p4), %s853_s25, 1024  }
  0xaa   : > { %1376 = vsyncadd (%p1068_p4), %s853_s25, 4294966272  ;;  %s27_s20 = sadd.s32 1, %s1399_s20   ;;  %s2323_s18 = sld [smem:[#allocation15_spill]] }
  0xab   : > { %p24_p9 = scmp.ge.s32.totalorder %s27_s20, 4   ;;  %s2324_s19 = sld [smem:[#allocation16_spill]] }
  0xac   : > { %s2325_s15 = smov %s1383_s16  ;;  %s2326_s16 = smov %s1387_s17 }
  0xad   : > { %s2327_s17 = smov %s1491_s29  ;;  %26 = sbr.rel (!%p24_p9) target bundleno = 12 (0xc), region = 122 }
  0xb2   :  { %869 = vsyncpa [#allocation3], 1 }
  0xb3   :  { %871 = vsyncpa [#allocation3 + $0x1], 1 }
  0xb4   :  { %872 = vsyncpa [#allocation6], 1 }
  0xb5   :  { %874 = vsyncpa [#allocation6 + $0x1], 1 }
  0xb6   :  { %875 = vsyncpa [#allocation4], 1 }
  0xb7   :  { %877 = vsyncpa [#allocation4 + $0x1], 1 }
  0xb8   :  { %878 = vsyncpa [#allocation9], 1 }
  0xb9   :  { %880 = vsyncpa [#allocation9 + $0x1], 1 }

</bundles_post_ra>
